<compile_context>
chip_gen: v6e
topology: v6e:2x2x1
jax: 0.10.0
libtpu: 0.0.40
codegen_flags: <defaults>
</compile_context>

<pallas_src>
import functools

import numpy as np
import jax
import jax.numpy as jnp
from jax import lax
from jax.experimental import pallas as pl
from jax.experimental.pallas import tpu as pltpu

LANE = 128        # vreg lane width / MXU-friendly vocab padding
TILE_M_MIN = 128  # minimum row tile (sublane/lane dense)
TILE_M_MAX = 512  # target row tile: amortizes ~0.35 us/grid-step overhead


def embed_lookup_kernel(ids_ref, table_ref, out_ref):
    # ids_ref  : (TILE_M, 1)   int32   — token id per output row (narrow block)
    # table_ref: (V_pad, D)    float32 — zero-padded table, VMEM resident
    # out_ref  : (TILE_M, D)   float32
    m_rows = out_ref.shape[0]
    v_pad = table_ref.shape[0]
    vocab_iota = lax.broadcasted_iota(jnp.int32, (m_rows, v_pad), dimension=1)
    # Lane broadcast of the (TILE_M, 1) ids happens here on the VPU.
    onehot = (ids_ref[...] == vocab_iota).astype(table_ref.dtype)   # (TILE_M, V_pad)
    # HIGHEST precision -> exact f32 row selection (one-hot * table).
    out_ref[...] = jnp.dot(
        onehot, table_ref[...],
        preferred_element_type=jnp.float32,
        precision=lax.Precision.HIGHEST,
    ).astype(out_ref.dtype)


def _round_up(x, m):
    return (x + m - 1) // m * m


def _choose_tile_m(m):
    """Pick a row tile: big tiles to amortize per-step overhead, but keep >= 2
    grid steps when the problem is large enough so "parallel" can shard rows
    across v7x's two TensorCores (irrelevant on 1-TC v5e/v6e)."""
    m128 = _round_up(max(m, TILE_M_MIN), TILE_M_MIN)
    if m128 <= TILE_M_MIN:
        return TILE_M_MIN, m128
    tile = min(TILE_M_MAX, max(TILE_M_MIN, _round_up(m128 // 2, TILE_M_MIN)))
    m_pad = _round_up(m128, tile)
    return tile, m_pad


def pad_embedding_table(emb_table):
    """Zero-pad the vocab axis up to a multiple of 128.  Call ONCE at init."""
    n_token, emb_dim = emb_table.shape
    v_pad = _round_up(max(n_token, LANE), LANE)
    if v_pad == n_token:
        return emb_table
    return jnp.zeros((v_pad, emb_dim), emb_table.dtype).at[:n_token].set(emb_table)


def build_slot_ids(tokens, src_len, n_token, t_out):
    """Cheap integer glue: for each (b, t) output slot, which vocab id to embed."""
    total = tokens.shape[0]
    B = src_len.shape[0]
    t = jnp.arange(t_out, dtype=jnp.int32)[None, :]              # (1, T_out)
    L = src_len[:, None].astype(jnp.int32)                       # (B, 1)
    if total > 0:
        offsets = jnp.concatenate(
            [jnp.zeros((1,), jnp.int32), jnp.cumsum(src_len)[:-1].astype(jnp.int32)])
        inner = jnp.clip(offsets[:, None] + t - 1, 0, total - 1)  # pos in flat stream
        data_id = tokens[inner]                                   # (B, T_out)
    else:
        # Empty token stream: every slot is START/END/NULL anyway.
        data_id = jnp.zeros((B, t_out), jnp.int32)
    ids = jnp.where(t == 0, n_token - 3,                          # START
          jnp.where(t == L + 1, n_token - 2,                      # END
          jnp.where(t > L + 1, n_token - 1,                       # NULL padding
                    data_id)))
    return ids.astype(jnp.int32)


@functools.partial(jax.jit, static_argnames=("max_len", "n_token"))
def embedding_in_forward(tokens, src_len, table_pad, *, max_len, n_token):
    """Pallas-backed equivalent of EmbeddingIn.forward for token input.

    table_pad: vocab-padded embedding table (pad_embedding_table, done once).
    max_len / n_token are static (config / host-side) -> no device->host sync.
    """
    v_pad, emb_dim = table_pad.shape
    B = src_len.shape[0]
    t_out = max_len + 2
    m = B * t_out

    tile_m, m_pad = _choose_tile_m(m)

    # Per-slot ids, flattened over (B, T_out); pad rows use NULL (sliced off later).
    ids = build_slot_ids(tokens, src_len, n_token, t_out).reshape(-1)
    ids = jnp.pad(ids, (0, m_pad - m), constant_values=n_token - 1)
    ids_col = ids[:, None]                                        # (m_pad, 1) narrow block

    out_flat = pl.pallas_call(
        embed_lookup_kernel,
        out_shape=jax.ShapeDtypeStruct((m_pad, emb_dim), jnp.float32),
        grid_spec=pltpu.PrefetchScalarGridSpec(
            num_scalar_prefetch=0,
            grid=(m_pad // tile_m,),
            in_specs=[
                # Narrow ids block: last dim equals full array dim (1), sublane
                # dim is a multiple of 8 -> legal and ~V_pad x less HBM read.
                pl.BlockSpec((tile_m, 1), lambda i: (i, 0)),
                # Full table, constant index_map -> kept VMEM resident.
                pl.BlockSpec((v_pad, emb_dim), lambda i: (0, 0)),
            ],
            out_specs=pl.BlockSpec((tile_m, emb_dim), lambda i: (i, 0)),
        ),
        compiler_params=pltpu.CompilerParams(
            dimension_semantics=("parallel",),        # rows shardable across TCs
            vmem_limit_bytes=32 * 1024 * 1024,        # explicit headroom, safe on all gens
        ),
    )(ids_col, table_pad)

    padded = out_flat[:m].reshape(B, t_out, emb_dim)
    return padded, src_len + 2


if __name__ == "__main__":
    # "config": in_vocab_size=32 (last 3 ids are START/END/NULL specials), emb_dim=128
    n_token = 32
    emb_dim = 128
    B = 4

    key = jax.random.PRNGKey(0)
    k_emb, k_tok = jax.random.split(key)

    # nn.Embedding weight with xavier_uniform init (deterministic via PRNGKey(0))
    bound = float(np.sqrt(6.0 / (n_token + emb_dim)))
    emb_table = jax.random.uniform(
        k_emb, (n_token, emb_dim), dtype=jnp.float32, minval=-bound, maxval=bound)
    # Pad the table ONCE at parameter init (hoisted out of the forward).
    table_pad = pad_embedding_table(emb_table)

    # Ragged batch: lengths kept host-side so max_len is static (no device sync).
    src_len_np = np.array([5, 3, 8, 6], dtype=np.int32)
    src_len = jnp.asarray(src_len_np)
    max_len = int(src_len_np.max())
    total = int(src_len_np.sum())
    tokens = jax.random.randint(k_tok, (total,), 0, n_token - 3, dtype=jnp.int32)

    out, out_len = embedding_in_forward(
        tokens, src_len, table_pad, max_len=max_len, n_token=n_token)
    out = jax.block_until_ready(out)
    out_len = jax.block_until_ready(out_len)

    # Pure-JAX reference of the PyTorch forward for verification
    t_out = max_len + 2
    ids_ref = build_slot_ids(tokens, src_len, n_token, t_out)
    ref = jnp.take(emb_table, ids_ref, axis=0)                   # (B, T_out, D)
    assert out.shape == (B, t_out, emb_dim)
    np.testing.assert_allclose(np.asarray(out), np.asarray(ref), rtol=1e-6, atol=1e-6)
    np.testing.assert_array_equal(np.asarray(out_len), src_len_np + 2)

    print("KERNEL_OK")
</pallas_src>

<mosaic_0001>
module attributes {stable_mosaic.version = 11 : i64} {
  func.func @embed_lookup_kernel(%arg0: i32, %arg1: memref<128x1xi32, #tpu.memory_space<vmem>>, %arg2: memref<128x128xf32, #tpu.memory_space<vmem>>, %arg3: memref<128x128xf32, #tpu.memory_space<vmem>>) attributes {dimension_semantics = [#tpu.dimension_semantics<parallel>], iteration_bounds = array<i64: 1>, scalar_prefetch = 0 : i64, scratch_operands = 0 : i64, tpu.core_type = #tpu.core_type<tc>, window_params = [{transform_indices = @transform_0, window_bounds = array<i64: 128, 1>}, {pipeline_mode = #tpu.pipeline_mode<synchronous>, transform_indices = @transform_1, window_bounds = array<i64: 128, 128>}, {transform_indices = @transform_2, window_bounds = array<i64: 128, 128>}]} {
    %0 = tpu.iota {dimensions = array<i32: 1>} : vector<128x128xi32>
    %c0 = arith.constant 0 : index
    %c0_0 = arith.constant 0 : index
    %1 = vector.load %arg1[%c0, %c0_0] : memref<128x1xi32, #tpu.memory_space<vmem>>, vector<128x1xi32>
    %2 = vector.broadcast %1 : vector<128x1xi32> to vector<128x128xi32>
    %3 = arith.cmpi eq, %2, %0 : vector<128x128xi32>
    %4 = arith.extui %3 : vector<128x128xi1> to vector<128x128xi32>
    %5 = arith.sitofp %4 : vector<128x128xi32> to vector<128x128xf32>
    %c0_1 = arith.constant 0 : index
    %c0_2 = arith.constant 0 : index
    %6 = vector.load %arg2[%c0_1, %c0_2] : memref<128x128xf32, #tpu.memory_space<vmem>>, vector<128x128xf32>
    %cst = arith.constant dense<0.000000e+00> : vector<128x128xf32>
    %7 = tpu.matmul %5, %6, %cst {dimension_numbers = #tpu.dot_dimension_numbers<[1], [0], [0], [1], [0, 0, 1, 1], [], []>, precision = #tpu.contract_precision<fp32>} : vector<128x128xf32>, vector<128x128xf32>, vector<128x128xf32> -> vector<128x128xf32>
    %c0_3 = arith.constant 0 : index
    %c0_4 = arith.constant 0 : index
    %8 = vector.load %arg3[%c0_3, %c0_4] : memref<128x128xf32, #tpu.memory_space<vmem>>, vector<128x128xf32>
    tpu.vector_store %arg3[%c0_3, %c0_4], %7 {strides = array<i32>} : memref<128x128xf32, #tpu.memory_space<vmem>>, vector<128x128xf32>,
    return
  }
  func.func @transform_0(%arg0: i32) -> (i32, i32) {
    %c0_i32 = arith.constant 0 : i32
    %c0_i32_0 = arith.constant 0 : i32
    return %arg0, %c0_i32 : i32, i32
  }
  func.func @transform_1(%arg0: i32) -> (i32, i32) {
    %c0_i32 = arith.constant 0 : i32
    %c0_i32_0 = arith.constant 0 : i32
    %c0_i32_1 = arith.constant 0 : i32
    return %c0_i32, %c0_i32_0 : i32, i32
  }
  func.func @transform_2(%arg0: i32) -> (i32, i32) {
    %c0_i32 = arith.constant 0 : i32
    %c0_i32_0 = arith.constant 0 : i32
    return %arg0, %c0_i32 : i32, i32
  }
}

</mosaic_0001>

<bundles_post_ra>
// kernel: embedding_in_forward.1
= control target key start
LH: loop header
LB: loop body
LE: loop exit
PB: predicated region body
PF: predicated region fallthrough
CT: control target
= control target key end

     0   :  { %v2044_v0 = vmov 0   ;;  %s3136_s0 = inlined_call_operand.vmem [shape: s32[128,1], index: 0, kind: input, shape index: {}]   ;;  %s3137_s1 = inlined_call_operand.vmem [shape: f32[128,128], index: 1, kind: input, shape index: {}]   ;;  %s3138_s2 = inlined_call_operand.vmem [shape: f32[128,128], index: 2, kind: output, shape index: {}]  }
   0x1   :  { %2043 = vset.pattern.permute.xlu1 %v2044_v0  ;;  %2042 = vset.pattern.permute.xlu0 %v2044_v0  ;;  %v15_v1 = vld [vmem:[%s3136_s0 + $0x10] sm:$0xff]  ;;  %v13_v2 = vld [vmem:[%s3136_s0] sm:$0xff]  ;;  %v16_v3 = vld [vmem:[%s3136_s0 + $0x18] sm:$0xff] }
   0x2   :  { %36 = vperm.xlu1 %2043, %v15_v1   ;;  %30 = vperm.xlu0 %2042, %v13_v2   ;;  %v14_v4 = vld [vmem:[%s3136_s0 + $0x8] sm:$0xff]  ;;  %v17_v6 = vld [vmem:[%s3136_s0 + $0x20] sm:$0xff]  ;;  %v140_v7 = vld [vmem:[%s3137_s1 + $0x78] sm:$0xff] }
   0x3   :  { %v18_v5 = vld [vmem:[%s3136_s0 + $0x28] sm:$0xff]  ;;  %v139_v8 = vld [vmem:[%s3137_s1 + $0x70] sm:$0xff]  ;;  %v2086_v9 = vand.u32 4294901760, %v140_v7  ;;  %v137_v12 = vld [vmem:[%s3137_s1 + $0x60] sm:$0xff] }
   0x4   :  { %v2088_v10 = vand.u32 4294901760, %v139_v8  ;;  %v138_v11 = vld [vmem:[%s3137_s1 + $0x68] sm:$0xff]  ;;  %v136_v13 = vld [vmem:[%s3137_s1 + $0x58] sm:$0xff]  ;;  %v2101_v15 = vand.u32 4294901760, %v137_v12  ;;  %v135_v17 = vld [vmem:[%s3137_s1 + $0x50] sm:$0xff] }
   0x5   :  { %v2099_v14 = vand.u32 4294901760, %v138_v11  ;;  %v2103_v16 = vand.u32 4294901760, %v136_v13  ;;  %v2109_v18 = vsub.f32 %v140_v7, %v2086_v9  ;;  %1703 = vmatprep.subr.mxu0 %v2086_v9  ;;  %v134_v20 = vld [vmem:[%s3137_s1 + $0x48] sm:$0xff]  ;;  %v20_v23 = vld [vmem:[%s3136_s0 + $0x38] sm:$0xff]  ;;  %v19_v24 = vld [vmem:[%s3136_s0 + $0x30] sm:$0xff]  ;;  %v2137_v27 = vand.u32 4294901760, %v135_v17 }
   0x6   :  { %39 = vperm.xlu1 %2043, %v16_v3   ;;  %33 = vperm.xlu0 %2042, %v14_v4   ;;  %v2112_v19 = vsub.f32 %v139_v8, %v2088_v10  ;;  %v2122_v22 = vsub.f32 %v137_v12, %v2101_v15  ;;  %v133_v28 = vld [vmem:[%s3137_s1 + $0x40] sm:$0xff]  ;;  %v2149_v31 = vand.u32 4294901760, %v134_v20  ;;  %v132_v36 = vld [vmem:[%s3137_s1 + $0x38] sm:$0xff]  ;;  %v22_v37 = vld [vmem:[%s3136_s0 + $0x48] sm:$0xff] }
   0x7   :  { %v2119_v21 = vsub.f32 %v138_v11, %v2099_v14  ;;  %v2131_v25 = vand.u32 4294901760, %v2109_v18  ;;  %1704 = vmatpush3.msra.mxu0 %v2086_v9  ;;  %v2146_v30 = vsub.f32 %v136_v13, %v2103_v16  ;;  %v2159_v35 = vand.u32 4294901760, %v133_v28  ;;  %v21_v38 = vld [vmem:[%s3136_s0 + $0x40] sm:$0xff]  ;;  %v131_v45 = vld [vmem:[%s3137_s1 + $0x30] sm:$0xff]  ;;  %v130_v49 = vld [vmem:[%s3137_s1 + $0x28] sm:$0xff] }
   0x8   :  { %v2134_v26 = vand.u32 4294901760, %v2112_v19  ;;  %1705 = vmatprep.subr.mxu0 %v2088_v10  ;;  %v2156_v34 = vand.u32 4294901760, %v2122_v22  ;;  %v2173_v41 = vsub.f32 %v135_v17, %v2137_v27  ;;  %v2180_v44 = vsub.f32 %v134_v20, %v2149_v31  ;;  %v24_v50 = vld [vmem:[%s3136_s0 + $0x58] sm:$0xff]  ;;  %v23_v51 = vld [vmem:[%s3136_s0 + $0x50] sm:$0xff]  ;;  %v129_v57 = vld [vmem:[%s3137_s1 + $0x20] sm:$0xff] }
   0x9   :  { %v2143_v29 = vand.u32 4294901760, %v2119_v21  ;;  %v386_v32 = vsub.f32 %v2109_v18, %v2131_v25  ;;  %1706 = vmatpush3.msra.mxu0 %v2088_v10  ;;  %v2177_v43 = vand.u32 4294901760, %v2146_v30  ;;  %v2189_v47 = vand.u32 4294901760, %v132_v36  ;;  %v128_v62 = vld [vmem:[%s3137_s1 + $0x18] sm:$0xff]  ;;  %v26_v63 = vld [vmem:[%s3136_s0 + $0x68] sm:$0xff]  ;;  %v25_v0 = vld [vmem:[%s3136_s0 + $0x60] sm:$0xff] }
   0xa   :  { %45 = vperm.xlu1 %2043, %v18_v5   ;;  %42 = vperm.xlu0 %2042, %v17_v6   ;;  %v393_v33 = vsub.f32 %v2112_v19, %v2134_v26  ;;  %v407_v46 = vsub.f32 %v2122_v22, %v2156_v34  ;;  %v2192_v48 = vsub.f32 %v133_v28, %v2159_v35  ;;  %v2204_v53 = vand.u32 4294901760, %v2173_v41  ;;  %v127_v6 = vld [vmem:[%s3137_s1 + $0x10] sm:$0xff]  ;;  %v126_v13 = vld [vmem:[%s3137_s1 + $0x8] sm:$0xff]  ;;  %v28_v17 = vld [vmem:[%s3136_s0 + $0x78] sm:$0xff] }
   0xb   :  { %v387_v39 = vand.u32 4294901760, %v386_v32  ;;  %v400_v40 = vsub.f32 %v2119_v21, %v2143_v29  ;;  %1707 = vmatprep.subr.mxu0 %v2099_v14  ;;  %v2207_v54 = vand.u32 4294901760, %v131_v45  ;;  %v414_v55 = vsub.f32 %v2146_v30, %v2177_v43  ;;  %v27_v20 = vld [vmem:[%s3136_s0 + $0x70] sm:$0xff] }
   0xc   :  { %v394_v42 = vand.u32 4294901760, %v393_v33  ;;  %1708 = vmatpush3.msra.mxu0 %v2099_v14  ;;  %v2212_v56 = vand.u32 4294901760, %v2180_v44  ;;  %v408_v58 = vand.u32 4294901760, %v407_v46  ;;  %v2219_v59 = vsub.f32 %v132_v36, %v2189_v47  ;;  %v125_v36 = vld [vmem:[%s3137_s1] sm:$0xff] }
   0xd   :  { %1759 = vmatprep.subr.mxu1 %v387_v39  ;;  %1709 = vmatprep.subr.mxu0 %v2101_v15  ;;  %v401_v52 = vand.u32 4294901760, %v400_v40  ;;  %v2222_v60 = vand.u32 4294901760, %v130_v49  ;;  %v2225_v61 = vand.u32 4294901760, %v2192_v48  ;;  %v421_v1 = vsub.f32 %v2173_v41, %v2204_v53 }
   0xe   :  { %51 = vperm.xlu1 %2043, %v20_v23   ;;  %48 = vperm.xlu0 %2042, %v19_v24   ;;  %v2240_v2 = vsub.f32 %v131_v45, %v2207_v54  ;;  %v2242_v3 = vand.u32 4294901760, %v129_v57  ;;  %v415_v4 = vand.u32 4294901760, %v414_v55  ;;  %v428_v5 = vsub.f32 %v2180_v44, %v2212_v56 }
   0xf   :  { %1760 = vmatpush3.msra.mxu1 %v387_v39  ;;  %1710 = vmatpush3.msra.mxu0 %v2101_v15  ;;  %v2251_v7 = vand.u32 4294901760, %v2219_v59  ;;  %v2255_v8 = vsub.f32 %v130_v49, %v2222_v60  ;;  %v2257_v11 = vand.u32 4294901760, %v128_v62  ;;  %v435_v12 = vsub.f32 %v2192_v48, %v2225_v61 }
  0x10   :  { %1761 = vmatprep.subr.mxu1 %v394_v42  ;;  %1711 = vmatprep.subr.mxu0 %v2103_v16  ;;  %v422_v23 = vand.u32 4294901760, %v421_v1  ;;  %v2271_v24 = vand.u32 4294901760, %v2240_v2  ;;  %v2275_v28 = vsub.f32 %v129_v57, %v2242_v3  ;;  %v2277_v32 = vand.u32 4294901760, %v127_v6 }
  0x11   :  { %1762 = vmatpush3.msra.mxu1 %v394_v42  ;;  %1712 = vmatpush3.msra.mxu0 %v2103_v16  ;;  %v429_v33 = vand.u32 4294901760, %v428_v5  ;;  %v2290_v39 = vsub.f32 %v128_v62, %v2257_v11  ;;  %v2292_v40 = vand.u32 4294901760, %v126_v13  ;;  %v436_v42 = vand.u32 4294901760, %v435_v12 }
  0x12   :  { %57 = vperm.xlu1 %2043, %v22_v37   ;;  %54 = vperm.xlu0 %2042, %v21_v38   ;;  %3188 = vst [vmem:[#allocation2_spill] sm:$0xff] %v2271_v24  ;;  %v442_v37 = vsub.f32 %v2219_v59, %v2251_v7  ;;  %v2286_v38 = vand.u32 4294901760, %v2255_v8  ;;  %v449_v45 = vsub.f32 %v2240_v2, %v2271_v24  ;;  %v2297_v46 = vand.u32 4294901760, %v2275_v28 }
  0x13   :  { %1763 = vmatprep.subr.mxu1 %v401_v52  ;;  %1713 = vmatprep.subr.mxu0 %v2137_v27  ;;  %v2301_v49 = vsub.f32 %v127_v6, %v2277_v32  ;;  %v2309_v55 = vand.u32 4294901760, %v2290_v39  ;;  %v2313_v57 = vsub.f32 %v126_v13, %v2292_v40 }
  0x14   :  { %1764 = vmatpush3.msra.mxu1 %v401_v52  ;;  %1714 = vmatpush3.msra.mxu0 %v2137_v27  ;;  %3189 = vst [vmem:[#allocation3_spill] sm:$0xff] %v2286_v38  ;;  %3190 = vst [vmem:[#allocation4_spill] sm:$0xff] %v2297_v46  ;;  %v456_v52 = vsub.f32 %v2255_v8, %v2286_v38  ;;  %v463_v62 = vsub.f32 %v2275_v28, %v2297_v46 }
  0x15   :  { %1765 = vmatprep.subr.mxu1 %v408_v58  ;;  %1715 = vmatprep.subr.mxu0 %v2149_v31  ;;  %3191 = vst [vmem:[#allocation5_spill] sm:$0xff] %v2309_v55  ;;  %v2329_v5 = vand.u32 4294901760, %v2313_v57 }
  0x16   :  { %63 = vperm.xlu1 %2043, %v24_v50   ;;  %60 = vperm.xlu0 %2042, %v23_v51   ;;  %v2303_v50 = vand.u32 4294901760, %v125_v36  ;;  %v443_v51 = vand.u32 4294901760, %v442_v37  ;;  %v457_v1 = vand.u32 4294901760, %v456_v52  ;;  %v464_v6 = vand.u32 4294901760, %v463_v62 }
  0x17   :  { %1766 = vmatpush3.msra.mxu1 %v408_v58  ;;  %1716 = vmatpush3.msra.mxu0 %v2149_v31  ;;  %v450_v58 = vand.u32 4294901760, %v449_v45  ;;  %3193 = vst [vmem:[#allocation7_spill] sm:$0xff] %v2329_v5 }
  0x18   :  { %1767 = vmatprep.subr.mxu1 %v415_v4  ;;  %1717 = vmatprep.subr.mxu0 %v2159_v35 }
  0x19   :  { %1768 = vmatpush3.msra.mxu1 %v415_v4  ;;  %1718 = vmatpush3.msra.mxu0 %v2159_v35  ;;  %v470_v4 = vsub.f32 %v2290_v39, %v2309_v55 }
  0x1a   :  { %69 = vperm.xlu1 %2043, %v26_v63   ;;  %66 = vperm.xlu0 %2042, %v25_v0   ;;  %v2319_v63 = vand.u32 4294901760, %v2301_v49  ;;  %v2323_v0 = vsub.f32 %v125_v36, %v2303_v50 }
  0x1b   :  { %1769 = vmatprep.subr.mxu1 %v422_v23  ;;  %1719 = vmatprep.subr.mxu0 %v2189_v47 }
  0x1c   :  { %1770 = vmatpush3.msra.mxu1 %v422_v23  ;;  %1720 = vmatpush3.msra.mxu0 %v2189_v47  ;;  %3192 = vst [vmem:[#allocation6_spill] sm:$0xff] %v2319_v63  ;;  %v477_v12 = vsub.f32 %v2301_v49, %v2319_v63  ;;  %v2336_v13 = vand.u32 4294901760, %v2323_v0 }
  0x1d   :  { %1771 = vmatprep.subr.mxu1 %v429_v33  ;;  %1721 = vmatprep.subr.mxu0 %v2207_v54 }
  0x1e   :  { %75 = vperm.xlu1 %2043, %v28_v17   ;;  %72 = vperm.xlu0 %2042, %v27_v20   ;;  %3194 = vst [vmem:[#allocation8_spill] sm:$0xff] %v2336_v13  ;;  %v471_v17 = vand.u32 4294901760, %v470_v4  ;;  %v484_v20 = vsub.f32 %v2313_v57, %v2329_v5  ;;  %v478_v23 = vand.u32 4294901760, %v477_v12  ;;  %v3141_v4 = vmov 1.0  }
  0x1f   :  { %1772 = vmatpush3.msra.mxu1 %v429_v33  ;;  %1722 = vmatpush3.msra.mxu0 %v2207_v54  ;;  %v491_v33 = vsub.f32 %v2323_v0, %v2336_v13  ;;  %v3202_v5 = vmov 1.0  }
  0x20   :  { %1773 = vmatprep.subr.mxu1 %v436_v42  ;;  %1723 = vmatprep.subr.mxu0 %v2222_v60  ;;  %v485_v36 = vand.u32 4294901760, %v484_v20 }
  0x21   :  { %1774 = vmatpush3.msra.mxu1 %v436_v42  ;;  %1724 = vmatpush3.msra.mxu0 %v2222_v60  ;;  %v492_v37 = vand.u32 4294901760, %v491_v33  ;;  %v11_v42 = vlaneseq }
  0x22   :  { %1775 = vmatprep.subr.mxu1 %v443_v51  ;;  %1725 = vmatprep.subr.mxu0 %v2242_v3 }
  0x23   :  { %1776 = vmatpush3.msra.mxu1 %v443_v51  ;;  %1726 = vmatpush3.msra.mxu0 %v2242_v3  ;;  %v2352_v45 = vand.u32 127, %v11_v42 }
  0x24   :  { %1777 = vmatprep.subr.mxu1 %v450_v58  ;;  %1727 = vmatprep.subr.mxu0 %v2257_v11 }
  0x25   :  { %1778 = vmatpush3.msra.mxu1 %v450_v58  ;;  %1728 = vmatpush3.msra.mxu0 %v2257_v11  ;;  %v3139_v58 = vmov 0.0  }
  0x26   :  { %1779 = vmatprep.subr.mxu1 %v457_v1  ;;  %1729 = vmatprep.subr.mxu0 %v2277_v32 }
  0x27   :  { %1780 = vmatpush3.msra.mxu1 %v457_v1  ;;  %1730 = vmatpush3.msra.mxu0 %v2277_v32 }
  0x28   :  { %1781 = vmatprep.subr.mxu1 %v464_v6  ;;  %1731 = vmatprep.subr.mxu0 %v2292_v40 }
  0x29   :  { %1782 = vmatpush3.msra.mxu1 %v464_v6  ;;  %1732 = vmatpush3.msra.mxu0 %v2292_v40 }
  0x2a   :  { %1783 = vmatprep.subr.mxu1 %v471_v17  ;;  %1733 = vmatprep.subr.mxu0 %v2303_v50 }
  0x2b   :  { %1784 = vmatpush3.msra.mxu1 %v471_v17  ;;  %1734 = vmatpush3.msra.mxu0 %v2303_v50 }
  0x2c   :  { %1785 = vmatprep.subr.mxu1 %v478_v23  ;;  %1815 = vmatprep.subr.mxu0 %v2109_v18 }
  0x2d   :  { %1786 = vmatpush3.msra.mxu1 %v478_v23 }
  0x2e   :  { %1787 = vmatprep.subr.mxu1 %v485_v36 }
  0x2f   :  { %1788 = vmatpush3.msra.mxu1 %v485_v36 }
  0x30   :  { %1789 = vmatprep.subr.mxu1 %v492_v37 }
  0x31   :  { %1790 = vmatpush3.msra.mxu1 %v492_v37 }
  0x32   :  { %1871 = vmatprep.subr.mxu1 %v2086_v9 }
  0x7d   :  { %v2354_v51 = vpop.permute.xlu1 %36  ;;  %v2356_v52 = vpop.permute.xlu0 %30 }
  0x7e   :  { %3195 = vst [vmem:[#allocation9_spill] sm:$0xff] %v2354_v51  ;;  %3196 = vst [vmem:[#allocation10_spill] sm:$0xff] %v2356_v52  ;;  %vm79_vm0 = vcmp.eq.s32.totalorder %v2354_v51, %v2352_v45  ;;  %vm77_vm1 = vcmp.eq.s32.totalorder %v2356_v52, %v2352_v45 }
  0x7f   :  { %v1449_v62 = vsel %vm79_vm0, 1.0, %v3139_v58  ;;  %v1447_v1 = vsel %vm77_vm1, 1.0, %v3139_v58  ;;  %1791 = vmatprep.mubr.msk.f32.mxu1 %vm77_vm1, %v3141_v4 }
  0x80   :  { %v2374_v6 = vsub.f32 %v1447_v1, %v1447_v1  ;;  %v2376_v12 = vsub.f32 %v1449_v62, %v1449_v62 }
  0x81   :  { %v2378_v17 = vpop.permute.xlu1 %39  ;;  %v2380_v20 = vpop.permute.xlu0 %33 }
  0x82   :  { %3197 = vst [vmem:[#allocation11_spill] sm:$0xff] %v2378_v17  ;;  %3198 = vst [vmem:[#allocation12_spill] sm:$0xff] %v2380_v20  ;;  %vm80_vm2 = vcmp.eq.s32.totalorder %v2378_v17, %v2352_v45  ;;  %vm78_vm3 = vcmp.eq.s32.totalorder %v2380_v20, %v2352_v45  ;;  %v3143_v23 = vand.u32 4294901760, %v2374_v6  ;;  %v3205_v20 = vand.u32 4294901760, %v2376_v12 }
  0x83   :  { %v1450_v33 = vsel %vm80_vm2, 1.0, %v3139_v58  ;;  %v1448_v36 = vsel %vm78_vm3, 1.0, %v3139_v58  ;;  %1792 = vmatmul.mubr.msk.f32.vlgmr.msra.gmra.mxu1 %vm78_vm3, %v3141_v4 }
  0x84   :  { %v2399_v37 = vsub.f32 %v1448_v36, %v1448_v36  ;;  %1794 = vmatprep.mubr.msk.f32.mxu1 %vm79_vm0, %v3141_v4  ;;  %1872 = vmatpush3.msra.mxu1 %v2086_v9  ;;  %v225_v42 = vsub.f32 %v2374_v6, %v3143_v23  ;;  %v2409_v62 = vsub.f32 %v1450_v33, %v1450_v33  ;;  %v3201_v23 = vmov 0.0  }
  0x85   :  { %v2411_v1 = vpop.permute.xlu1 %45  ;;  %1873 = vmatprep.subr.mxu1 %v2088_v10  ;;  %v2414_v58 = vpop.permute.xlu0 %42 }
  0x86   :  { %3199 = vst [vmem:[#allocation13_spill] sm:$0xff] %v2411_v1  ;;  %3200 = vst [vmem:[#allocation14_spill] sm:$0xff] %v2414_v58  ;;  %vm82_vm4 = vcmp.eq.s32.totalorder %v2411_v1, %v2352_v45  ;;  %vm81_vm5 = vcmp.eq.s32.totalorder %v2414_v58, %v2352_v45  ;;  %1874 = vmatpush3.msra.mxu1 %v2088_v10  ;;  %v226_v4 = vand.u32 4294901760, %v225_v42  ;;  %v3156_v33 = vand.u32 4294901760, %v2399_v37 }
  0x87   :  { %v1451_v13 = vsel %vm81_vm5, 1.0, %v3201_v23  ;;  %1795 = vmatmul.mubr.msk.f32.gmra.mxu1 %vm80_vm2, %v3202_v5  ;;  %1875 = vmatprep.subr.mxu1 %v2099_v14  ;;  %v1452_v36 = vsel %vm82_vm4, 1.0, %v3201_v23  ;;  %v3208_v1 = vand.u32 4294901760, %v2409_v62 }
  0x88   :  { %v2436_v42 = vsub.f32 %v1451_v13, %v1451_v13  ;;  %1735 = vmatprep.mubr.f32.mxu0 %v226_v4  ;;  %1797 = vmatprep.mubr.msk.f32.mxu1 %vm81_vm5, %v3202_v5  ;;  %v235_v17 = vsub.f32 %v2399_v37, %v3156_v33  ;;  %v245_v13 = vsub.f32 %v2376_v12, %v3205_v20 }
  0x89   :  { %1876 = vmatpush3.msra.mxu1 %v2099_v14  ;;  %v2446_v63 = vpop.permute.xlu1 %51  ;;  %v2448_v51 = vpop.permute.xlu0 %48  ;;  %v2460_v55 = vsub.f32 %v1452_v36, %v1452_v36  ;;  %v255_v46 = vsub.f32 %v2409_v62, %v3208_v1 }
  0x8a   :  { %3203 = vst [vmem:[#allocation15_spill] sm:$0xff] %v2446_v63  ;;  %3204 = vst [vmem:[#allocation16_spill] sm:$0xff] %v2448_v51  ;;  %vm84_vm6 = vcmp.eq.s32.totalorder %v2446_v63, %v2352_v45  ;;  %1877 = vmatprep.subr.mxu1 %v2101_v15  ;;  %vm83_vm7 = vcmp.eq.s32.totalorder %v2448_v51, %v2352_v45  ;;  %v236_v33 = vand.u32 4294901760, %v235_v17  ;;  %v3209_v52 = vand.u32 4294901760, %v2436_v42 }
  0x8b   :  { %v1453_v20 = vsel %vm83_vm7, 1.0, %v3201_v23  ;;  %1878 = vmatpush3.msra.mxu1 %v2101_v15  ;;  %v1454_v17 = vsel %vm84_vm6, 1.0, %v3201_v23 }
  0x8c   :  { %v2467_v4 = vsub.f32 %v1453_v20, %v1453_v20  ;;  %1798 = vmatmul.mubr.msk.f32.gmra.mxu1 %vm82_vm4, %v3202_v5  ;;  %1879 = vmatprep.subr.mxu1 %v2103_v16  ;;  %v246_v20 = vand.u32 4294901760, %v245_v13  ;;  %v265_v38 = vsub.f32 %v2436_v42, %v3209_v52  ;;  %v2503_v52 = vsub.f32 %v1454_v17, %v1454_v17 }
  0x8d   :  { %1736 = vmatmul.mubr.f32.vlgmr.msra.gmra.mxu0 %v236_v33  ;;  %1800 = vmatprep.mubr.msk.f32.mxu1 %vm83_vm7, %v3202_v5  ;;  %v2482_v36 = vpop.permute.xlu1 %57  ;;  %v2484_v58 = vpop.permute.xlu0 %54 }
  0x8e   :  { %3206 = vst [vmem:[#allocation17_spill] sm:$0xff] %v2482_v36  ;;  %3207 = vst [vmem:[#allocation18_spill] sm:$0xff] %v2484_v58  ;;  %1816 = vmatpush3.msra.mxu0 %v2109_v18  ;;  %1880 = vmatpush3.msra.mxu1 %v2103_v16  ;;  %vm85_vm8 = vcmp.eq.s32.totalorder %v2484_v58, %v2352_v45  ;;  %v3177_v13 = vand.u32 4294901760, %v2467_v4  ;;  %vm86_vm9 = vcmp.eq.s32.totalorder %v2482_v36, %v2352_v45 }
  0x8f   :  { %1738 = vmatprep.mubr.f32.mxu0 %v246_v20  ;;  %1817 = vmatprep.subr.mxu0 %v2112_v19  ;;  %v1455_v33 = vsel %vm85_vm8, 1.0, %v3201_v23  ;;  %v256_v20 = vand.u32 4294901760, %v255_v46  ;;  %v266_v51 = vand.u32 4294901760, %v265_v38  ;;  %v3211_v46 = vand.u32 4294901760, %v2460_v55 }
  0x90   :  { %1881 = vmatprep.subr.mxu1 %v2137_v27  ;;  %1818 = vmatpush3.msra.mxu0 %v2112_v19  ;;  %v2509_v18 = vsub.f32 %v1455_v33, %v1455_v33  ;;  %v1456_v19 = vsel %vm86_vm9, 1.0, %v3201_v23  ;;  %v285_v33 = vsub.f32 %v2467_v4, %v3177_v13  ;;  %v3178_v58 = vand.u32 4294901760, %v2503_v52 }
  0x91   :  { %1882 = vmatpush3.msra.mxu1 %v2137_v27  ;;  %1819 = vmatprep.subr.mxu0 %v2119_v21  ;;  %v2513_v1 = vpop.permute.xlu0 %60  ;;  %v2530_v38 = vpop.permute.xlu1 %63  ;;  %v275_v17 = vsub.f32 %v2460_v55, %v3211_v46  ;;  %v2549_v24 = vsub.f32 %v1456_v19, %v1456_v19 }
  0x92   :  { %3210 = vst [vmem:[#allocation19_spill] sm:$0xff] %v2513_v1  ;;  %1801 = vmatmul.mubr.msk.f32.gmra.mxu1 %vm84_vm6, %v3202_v5  ;;  %1883 = vmatprep.subr.mxu1 %v2149_v31  ;;  %vm87_vm10 = vcmp.eq.s32.totalorder %v2513_v1, %v2352_v45  ;;  %v3179_v46 = vand.u32 4294901760, %v2509_v18  ;;  %vm88_vm11 = vcmp.eq.s32.totalorder %v2530_v38, %v2352_v45  ;;  %v286_v13 = vand.u32 4294901760, %v285_v33 }
  0x93   :  { %1739 = vmatmul.mubr.f32.gmra.mxu0 %v256_v20  ;;  %1803 = vmatprep.mubr.msk.f32.mxu1 %vm85_vm8, %v3202_v5  ;;  %v1457_v20 = vsel %vm87_vm10, 1.0, %v3201_v23  ;;  %v1458_v19 = vsel %vm88_vm11, 1.0, %v3201_v23 }
  0x94   :  { %1820 = vmatpush3.msra.mxu0 %v2119_v21  ;;  %1884 = vmatpush3.msra.mxu1 %v2149_v31  ;;  %v2555_v21 = vsub.f32 %v1457_v20, %v1457_v20  ;;  %v2593_v1 = vsub.f32 %v1458_v19, %v1458_v19 }
  0x95   :  { %1741 = vmatprep.mubr.f32.mxu0 %v266_v51  ;;  %1821 = vmatprep.subr.mxu0 %v2122_v22  ;;  %v2546_v63 = vpop.permute.xlu0 %66  ;;  %v276_v51 = vand.u32 4294901760, %v275_v17  ;;  %v305_v17 = vsub.f32 %v2509_v18, %v3179_v46  ;;  %v2582_v33 = vpop.permute.xlu1 %69 }
  0x96   :  { %3212 = vst [vmem:[#allocation20_spill] sm:$0xff] %v2546_v63  ;;  %1885 = vmatprep.subr.mxu1 %v2159_v35  ;;  %1822 = vmatpush3.msra.mxu0 %v2122_v22  ;;  %vm89_vm12 = vcmp.eq.s32.totalorder %v2546_v63, %v2352_v45  ;;  %v295_v22 = vsub.f32 %v2503_v52, %v3178_v58  ;;  %v3185_v58 = vand.u32 4294901760, %v2549_v24  ;;  %v3184_v46 = vand.u32 4294901760, %v2555_v21 }
  0x97   :  { %1886 = vmatpush3.msra.mxu1 %v2159_v35  ;;  %1823 = vmatprep.subr.mxu0 %v2146_v30  ;;  %v1459_v20 = vsel %vm89_vm12, 1.0, %v3201_v23  ;;  %vm90_vm13 = vcmp.eq.s32.totalorder %v2582_v33, %v2352_v45 }
  0x98   :  { %1804 = vmatmul.mubr.msk.f32.gmra.mxu1 %vm86_vm9, %v3202_v5  ;;  %1887 = vmatprep.subr.mxu1 %v2189_v47  ;;  %v2599_v36 = vsub.f32 %v1459_v20, %v1459_v20  ;;  %v1460_v19 = vsel %vm90_vm13, 1.0, %v3201_v23 }
  0x99   :  { %1742 = vmatmul.mubr.f32.gmra.mxu0 %v276_v51  ;;  %1806 = vmatprep.mubr.msk.f32.mxu1 %vm87_vm10, %v3202_v5  ;;  %v2588_v51 = vpop.permute.xlu0 %72 }
  0x9a   :  { %1824 = vmatpush3.msra.mxu0 %v2146_v30  ;;  %1888 = vmatpush3.msra.mxu1 %v2189_v47  ;;  %v296_v30 = vand.u32 4294901760, %v295_v22  ;;  %vm91_vm14 = vcmp.eq.s32.totalorder %v2588_v51, %v2352_v45  ;;  %v325_v22 = vsub.f32 %v2555_v21, %v3184_v46  ;;  %v344_v46 = vand.u32 4294901760, %v2599_v36 }
  0x9b   :  { %1744 = vmatprep.mubr.f32.mxu0 %v286_v13  ;;  %1825 = vmatprep.subr.mxu0 %v2173_v41  ;;  %v306_v13 = vand.u32 4294901760, %v305_v17  ;;  %v2626_v17 = vpop.permute.xlu1 %75  ;;  %v1461_v20 = vsel %vm91_vm14, 1.0, %v3201_v23 }
  0x9c   :  { %1889 = vmatprep.subr.mxu1 %v2207_v54  ;;  %1826 = vmatpush3.msra.mxu0 %v2173_v41  ;;  %v315_v41 = vsub.f32 %v2549_v24, %v3185_v58  ;;  %v2637_v58 = vsub.f32 %v1460_v19, %v1460_v19  ;;  %vm92_vm15 = vcmp.eq.s32.totalorder %v2626_v17, %v2352_v45 }
  0x9d   :  { %1890 = vmatpush3.msra.mxu1 %v2207_v54  ;;  %1827 = vmatprep.subr.mxu0 %v2180_v44  ;;  %v2641_v63 = vsub.f32 %v1461_v20, %v1461_v20 }
  0x9e   :  { %1807 = vmatmul.mubr.msk.f32.gmra.mxu1 %vm88_vm11, %v3202_v5  ;;  %1891 = vmatprep.subr.mxu1 %v2222_v60  ;;  %v354_v19 = vand.u32 4294901760, %v2637_v58 }
  0x9f   :  { %1745 = vmatmul.mubr.f32.gmra.mxu0 %v296_v30  ;;  %1809 = vmatprep.mubr.msk.f32.mxu1 %vm89_vm12, %v3202_v5  ;;  %v334_v30 = vand.u32 4294901760, %v2593_v1  ;;  %v364_v20 = vand.u32 4294901760, %v2641_v63 }
  0xa0   :  { %1828 = vmatpush3.msra.mxu0 %v2180_v44  ;;  %1892 = vmatpush3.msra.mxu1 %v2222_v60  ;;  %v316_v44 = vand.u32 4294901760, %v315_v41  ;;  %v345_v41 = vsub.f32 %v2599_v36, %v344_v46 }
  0xa1   :  { %1747 = vmatprep.mubr.f32.mxu0 %v306_v13  ;;  %1829 = vmatprep.subr.mxu0 %v2192_v48  ;;  %v326_v13 = vand.u32 4294901760, %v325_v22  ;;  %v1462_v22 = vsel %vm92_vm15, 1.0, %v3201_v23 }
  0xa2   :  { %1893 = vmatprep.subr.mxu1 %v2242_v3  ;;  %1830 = vmatpush3.msra.mxu0 %v2192_v48  ;;  %v335_v48 = vsub.f32 %v2593_v1, %v334_v30  ;;  %v346_v23 = vand.u32 4294901760, %v345_v41 }
  0xa3   :  { %1894 = vmatpush3.msra.mxu1 %v2242_v3  ;;  %1831 = vmatprep.subr.mxu0 %v2219_v59 }
  0xa4   :  { %1810 = vmatmul.mubr.msk.f32.gmra.mxu1 %vm90_vm13, %v3202_v5  ;;  %1895 = vmatprep.subr.mxu1 %v2257_v11 }
  0xa5   :  { %1748 = vmatmul.mubr.f32.gmra.mxu0 %v316_v44  ;;  %1812 = vmatprep.mubr.msk.f32.mxu1 %vm91_vm14, %v3202_v5  ;;  %v2671_v44 = vsub.f32 %v1462_v22, %v1462_v22 }
  0xa6   :  { %1832 = vmatpush3.msra.mxu0 %v2219_v59  ;;  %1896 = vmatpush3.msra.mxu1 %v2257_v11  ;;  %v336_v59 = vand.u32 4294901760, %v335_v48  ;;  %v3213_v48 = vand.u32 4294901760, %v2374_v6 }
  0xa7   :  { %1750 = vmatprep.mubr.f32.mxu0 %v326_v13  ;;  %1833 = vmatprep.subr.mxu0 %v2240_v2  ;;  %v365_v13 = vsub.f32 %v2641_v63, %v364_v20  ;;  %v374_v41 = vand.u32 4294901760, %v2671_v44 }
  0xa8   :  { %1897 = vmatprep.subr.mxu1 %v2277_v32  ;;  %1834 = vmatpush3.msra.mxu0 %v2240_v2  ;;  %v355_v2 = vsub.f32 %v2637_v58, %v354_v19 }
  0xa9   :  { %1898 = vmatpush3.msra.mxu1 %v2277_v32  ;;  %1835 = vmatprep.subr.mxu0 %v2255_v8 }
  0xaa   :  { %1813 = vmatmul.mubr.msk.f32.gmra.mxu1 %vm92_vm15, %v3202_v5  ;;  %1899 = vmatprep.subr.mxu1 %v2292_v40  ;;  %v356_v22 = vand.u32 4294901760, %v355_v2  ;;  %v3216_v2 = vand.u32 4294901760, %v2409_v62 }
  0xab   :  { %1751 = vmatmul.mubr.f32.gmra.mxu0 %v336_v59  ;;  %1900 = vmatpush3.msra.mxu1 %v2292_v40  ;;  %v366_v59 = vand.u32 4294901760, %v365_v13 }
  0xac   :  { %1836 = vmatpush3.msra.mxu0 %v2255_v8  ;;  %1903 = vmatprep.mubr.f32.mxu1 %v3213_v48  ;;  %v3214_v8 = vand.u32 4294901760, %v2399_v37  ;;  %v375_v48 = vsub.f32 %v2671_v44, %v374_v41 }
  0xad   :  { %1753 = vmatprep.mubr.f32.mxu0 %v346_v23  ;;  %1837 = vmatprep.subr.mxu0 %v2275_v28  ;;  %v3215_v23 = vand.u32 4294901760, %v2376_v12 }
  0xae   :  { %1901 = vmatprep.subr.mxu1 %v2303_v50  ;;  %1838 = vmatpush3.msra.mxu0 %v2275_v28  ;;  %v376_v28 = vand.u32 4294901760, %v375_v48 }
  0xaf   :  { %1902 = vmatpush3.msra.mxu1 %v2303_v50  ;;  %1839 = vmatprep.subr.mxu0 %v2290_v39 }
  0xb0   :  { %1904 = vmatmul.mubr.f32.vlgmr.msra.gmra.mxu1 %v3214_v8  ;;  %1983 = vmatprep.subr.mxu1 %v2086_v9 }
  0xb1   :  { %1754 = vmatmul.mubr.f32.gmra.mxu0 %v356_v22  ;;  %1906 = vmatprep.mubr.f32.mxu1 %v3215_v23 }
  0xb2   :  { %1840 = vmatpush3.msra.mxu0 %v2290_v39  ;;  %1984 = vmatpush3.msra.mxu1 %v2086_v9  ;;  %v3217_v9 = vand.u32 4294901760, %v2436_v42 }
  0xb3   :  { %1756 = vmatprep.mubr.f32.mxu0 %v366_v59  ;;  %1841 = vmatprep.subr.mxu0 %v2301_v49 }
  0xb4   :  { %1985 = vmatprep.subr.mxu1 %v2088_v10  ;;  %1842 = vmatpush3.msra.mxu0 %v2301_v49 }
  0xb5   :  { %1986 = vmatpush3.msra.mxu1 %v2088_v10  ;;  %1843 = vmatprep.subr.mxu0 %v2313_v57  ;;  %v3218_v10 = vand.u32 4294901760, %v2460_v55 }
  0xb6   :  { %1907 = vmatmul.mubr.f32.gmra.mxu1 %v3216_v2  ;;  %1987 = vmatprep.subr.mxu1 %v2099_v14 }
  0xb7   :  { %1757 = vmatmul.mubr.f32.gmra.mxu0 %v376_v28  ;;  %1909 = vmatprep.mubr.f32.mxu1 %v3217_v9 }
  0xb8   :  { %1844 = vmatpush3.msra.mxu0 %v2313_v57  ;;  %1988 = vmatpush3.msra.mxu1 %v2099_v14  ;;  %v3219_v14 = vand.u32 4294901760, %v2467_v4 }
  0xb9   :  { %1845 = vmatprep.subr.mxu0 %v2323_v0  ;;  %1847 = vmatprep.mubr.f32.mxu0 %v2374_v6 }
  0xba   :  { %1989 = vmatprep.subr.mxu1 %v2101_v15  ;;  %1846 = vmatpush3.msra.mxu0 %v2323_v0 }
  0xbb   :  { %1990 = vmatpush3.msra.mxu1 %v2101_v15  ;;  %1927 = vmatprep.subr.mxu0 %v2131_v25  ;;  %v3220_v15 = vand.u32 4294901760, %v2503_v52 }
  0xbc   :  { %1910 = vmatmul.mubr.f32.gmra.mxu1 %v3218_v10  ;;  %1991 = vmatprep.subr.mxu1 %v2103_v16 }
  0xbd   :  { %1848 = vmatmul.mubr.f32.vlgmr.msra.gmra.mxu0 %v2399_v37  ;;  %1912 = vmatprep.mubr.f32.mxu1 %v3219_v14 }
  0xbe   :  { %1928 = vmatpush3.msra.mxu0 %v2131_v25  ;;  %1992 = vmatpush3.msra.mxu1 %v2103_v16  ;;  %v3221_v16 = vand.u32 4294901760, %v2509_v18  ;;  %v3222_v25 = vand.u32 4294901760, %v2549_v24 }
  0xbf   :  { %1850 = vmatprep.mubr.f32.mxu0 %v2376_v12  ;;  %1929 = vmatprep.subr.mxu0 %v2134_v26 }
  0xc0   :  { %1993 = vmatprep.subr.mxu1 %v2137_v27  ;;  %1930 = vmatpush3.msra.mxu0 %v2134_v26  ;;  %v3223_v26 = vand.u32 4294901760, %v2555_v21 }
  0xc1   :  { %1994 = vmatpush3.msra.mxu1 %v2137_v27  ;;  %1931 = vmatprep.subr.mxu0 %v2143_v29  ;;  %v3224_v27 = vld [vmem:[#allocation2_spill] sm:$0xff] }
  0xc2   :  { %1913 = vmatmul.mubr.f32.gmra.mxu1 %v3220_v15  ;;  %1995 = vmatprep.subr.mxu1 %v2149_v31 }
  0xc3   :  { %1851 = vmatmul.mubr.f32.gmra.mxu0 %v2409_v62  ;;  %1915 = vmatprep.mubr.f32.mxu1 %v3221_v16 }
  0xc4   :  { %1932 = vmatpush3.msra.mxu0 %v2143_v29  ;;  %1996 = vmatpush3.msra.mxu1 %v2149_v31  ;;  %v3225_v29 = vld [vmem:[#allocation3_spill] sm:$0xff] }
  0xc5   :  { %1853 = vmatprep.mubr.f32.mxu0 %v2436_v42  ;;  %1933 = vmatprep.subr.mxu0 %v2156_v34 }
  0xc6   :  { %1997 = vmatprep.subr.mxu1 %v2159_v35  ;;  %1934 = vmatpush3.msra.mxu0 %v2156_v34  ;;  %v3227_v34 = vld [vmem:[#allocation4_spill] sm:$0xff] }
  0xc7   :  { %1998 = vmatpush3.msra.mxu1 %v2159_v35  ;;  %1935 = vmatprep.subr.mxu0 %v2177_v43  ;;  %v3228_v35 = vld [vmem:[#allocation5_spill] sm:$0xff] }
  0xc8   :  { %1916 = vmatmul.mubr.f32.gmra.mxu1 %v3222_v25  ;;  %1999 = vmatprep.subr.mxu1 %v2189_v47 }
  0xc9   :  { %1854 = vmatmul.mubr.f32.gmra.mxu0 %v2460_v55  ;;  %1918 = vmatprep.mubr.f32.mxu1 %v3223_v26 }
  0xca   :  { %1936 = vmatpush3.msra.mxu0 %v2177_v43  ;;  %2000 = vmatpush3.msra.mxu1 %v2189_v47 }
  0xcb   :  { %1856 = vmatprep.mubr.f32.mxu0 %v2467_v4  ;;  %1937 = vmatprep.subr.mxu0 %v2204_v53 }
  0xcc   :  { %2001 = vmatprep.subr.mxu1 %v2207_v54  ;;  %1938 = vmatpush3.msra.mxu0 %v2204_v53  ;;  %v3231_v53 = vld [vmem:[#allocation6_spill] sm:$0xff] }
  0xcd   :  { %2002 = vmatpush3.msra.mxu1 %v2207_v54  ;;  %1939 = vmatprep.subr.mxu0 %v2212_v56  ;;  %v3232_v54 = vld [vmem:[#allocation7_spill] sm:$0xff] }
  0xce   :  { %1919 = vmatmul.mubr.f32.gmra.mxu1 %v334_v30  ;;  %2003 = vmatprep.subr.mxu1 %v2222_v60 }
  0xcf   :  { %1857 = vmatmul.mubr.f32.gmra.mxu0 %v2503_v52  ;;  %1921 = vmatprep.mubr.f32.mxu1 %v344_v46 }
  0xd0   :  { %1940 = vmatpush3.msra.mxu0 %v2212_v56  ;;  %2004 = vmatpush3.msra.mxu1 %v2222_v60 }
  0xd1   :  { %1859 = vmatprep.mubr.f32.mxu0 %v2509_v18  ;;  %1941 = vmatprep.subr.mxu0 %v2225_v61 }
  0xd2   :  { %2005 = vmatprep.subr.mxu1 %v2242_v3  ;;  %1942 = vmatpush3.msra.mxu0 %v2225_v61  ;;  %v3235_v61 = vld [vmem:[#allocation8_spill] sm:$0xff] }
  0xd3   :  { %2006 = vmatpush3.msra.mxu1 %v2242_v3  ;;  %1943 = vmatprep.subr.mxu0 %v2251_v7 }
  0xd4   :  { %1922 = vmatmul.mubr.f32.gmra.mxu1 %v354_v19  ;;  %2007 = vmatprep.subr.mxu1 %v2257_v11 }
  0xd5   :  { %1860 = vmatmul.mubr.f32.gmra.mxu0 %v2549_v24  ;;  %1924 = vmatprep.mubr.f32.mxu1 %v364_v20 }
  0xd6   :  { %1944 = vmatpush3.msra.mxu0 %v2251_v7  ;;  %2008 = vmatpush3.msra.mxu1 %v2257_v11 }
  0xd7   :  { %1862 = vmatprep.mubr.f32.mxu0 %v2555_v21  ;;  %1945 = vmatprep.subr.mxu0 %v3224_v27 }
  0xd8   :  { %2009 = vmatprep.subr.mxu1 %v2277_v32  ;;  %1946 = vmatpush3.msra.mxu0 %v3224_v27 }
  0xd9   :  { %2010 = vmatpush3.msra.mxu1 %v2277_v32  ;;  %1947 = vmatprep.subr.mxu0 %v3225_v29 }
  0xda   :  { %1925 = vmatmul.mubr.f32.gmra.mxu1 %v374_v41  ;;  %2011 = vmatprep.subr.mxu1 %v2292_v40 }
  0xdb   :  { %1863 = vmatmul.mubr.f32.gmra.mxu0 %v2593_v1  ;;  %2012 = vmatpush3.msra.mxu1 %v2292_v40 }
  0xdc   :  { %1948 = vmatpush3.msra.mxu0 %v3225_v29  ;;  %2015 = vmatprep.mubr.msk.f32.mxu1 %vm77_vm1, %v3202_v5 }
  0xdd   :  { %1865 = vmatprep.mubr.f32.mxu0 %v2599_v36  ;;  %1949 = vmatprep.subr.mxu0 %v3227_v34 }
  0xde   :  { %2013 = vmatprep.subr.mxu1 %v2303_v50  ;;  %1950 = vmatpush3.msra.mxu0 %v3227_v34 }
  0xdf   :  { %2014 = vmatpush3.msra.mxu1 %v2303_v50  ;;  %1951 = vmatprep.subr.mxu0 %v3228_v35 }
  0xe0   :  { %2016 = vmatmul.mubr.msk.f32.vlgmr.msra.gmra.mxu1 %vm78_vm3, %v3202_v5  ;;  %1866 = vmatmul.mubr.f32.gmra.mxu0 %v2637_v58 }
  0xe1   :  { %1952 = vmatpush3.msra.mxu0 %v3228_v35  ;;  %2018 = vmatprep.mubr.msk.f32.mxu1 %vm79_vm0, %v3202_v5 }
  0xe2   :  { %1868 = vmatprep.mubr.f32.mxu0 %v2641_v63  ;;  %1953 = vmatprep.subr.mxu0 %v3231_v53 }
  0xe3   :  { %1954 = vmatpush3.msra.mxu0 %v3231_v53 }
  0xe4   :  { %1955 = vmatprep.subr.mxu0 %v3232_v54  ;;  %2019 = vmatmul.mubr.msk.f32.gmra.mxu1 %vm80_vm2, %v3202_v5 }
  0xe5   :  { %1869 = vmatmul.mubr.f32.gmra.mxu0 %v2671_v44  ;;  %2021 = vmatprep.mubr.msk.f32.mxu1 %vm81_vm5, %v3202_v5 }
  0xe6   :  { %1956 = vmatpush3.msra.mxu0 %v3232_v54  ;;  %1959 = vmatprep.mubr.msk.f32.mxu0 %vm77_vm1, %v3202_v5 }
  0xe7   :  { %1957 = vmatprep.subr.mxu0 %v3235_v61 }
  0xe8   :  { %1958 = vmatpush3.msra.mxu0 %v3235_v61  ;;  %2022 = vmatmul.mubr.msk.f32.gmra.mxu1 %vm82_vm4, %v3202_v5 }
  0xe9   :  { %1960 = vmatmul.mubr.msk.f32.vlgmr.msra.gmra.mxu0 %vm78_vm3, %v3202_v5  ;;  %2024 = vmatprep.mubr.msk.f32.mxu1 %vm83_vm7, %v3202_v5 }
  0xea   :  { %1962 = vmatprep.mubr.msk.f32.mxu0 %vm79_vm0, %v3202_v5 }
  0xec   :  { %2025 = vmatmul.mubr.msk.f32.gmra.mxu1 %vm84_vm6, %v3202_v5 }
  0xed   :  { %1963 = vmatmul.mubr.msk.f32.gmra.mxu0 %vm80_vm2, %v3202_v5  ;;  %2027 = vmatprep.mubr.msk.f32.mxu1 %vm85_vm8, %v3202_v5 }
  0xee   :  { %1965 = vmatprep.mubr.msk.f32.mxu0 %vm81_vm5, %v3202_v5 }
  0xf0   :  { %2028 = vmatmul.mubr.msk.f32.gmra.mxu1 %vm86_vm9, %v3202_v5 }
  0xf1   :  { %1966 = vmatmul.mubr.msk.f32.gmra.mxu0 %vm82_vm4, %v3202_v5  ;;  %2030 = vmatprep.mubr.msk.f32.mxu1 %vm87_vm10, %v3202_v5 }
  0xf2   :  { %1968 = vmatprep.mubr.msk.f32.mxu0 %vm83_vm7, %v3202_v5 }
  0xf4   :  { %2031 = vmatmul.mubr.msk.f32.gmra.mxu1 %vm88_vm11, %v3202_v5 }
  0xf5   :  { %1969 = vmatmul.mubr.msk.f32.gmra.mxu0 %vm84_vm6, %v3202_v5  ;;  %2033 = vmatprep.mubr.msk.f32.mxu1 %vm89_vm12, %v3202_v5 }
  0xf6   :  { %1971 = vmatprep.mubr.msk.f32.mxu0 %vm85_vm8, %v3202_v5 }
  0xf8   :  { %2034 = vmatmul.mubr.msk.f32.gmra.mxu1 %vm90_vm13, %v3202_v5 }
  0xf9   :  { %1972 = vmatmul.mubr.msk.f32.gmra.mxu0 %vm86_vm9, %v3202_v5  ;;  %2036 = vmatprep.mubr.msk.f32.mxu1 %vm91_vm14, %v3202_v5 }
  0xfa   :  { %1974 = vmatprep.mubr.msk.f32.mxu0 %vm87_vm10, %v3202_v5 }
  0xfc   :  { %2037 = vmatmul.mubr.msk.f32.gmra.mxu1 %vm92_vm15, %v3202_v5 }
  0xfd   :  { %1975 = vmatmul.mubr.msk.f32.gmra.mxu0 %vm88_vm11, %v3202_v5 }
  0xfe   :  { %1977 = vmatprep.mubr.msk.f32.mxu0 %vm89_vm12, %v3202_v5 }
 0x101   :  { %1978 = vmatmul.mubr.msk.f32.gmra.mxu0 %vm90_vm13, %v3202_v5 }
 0x102   :  { %1980 = vmatprep.mubr.msk.f32.mxu0 %vm91_vm14, %v3202_v5 }
 0x105   :  { %1981 = vmatmul.mubr.msk.f32.gmra.mxu0 %vm92_vm15, %v3202_v5 }
 0x143   :  { %v1793_v49 = vpop.f32.mrf.mxu1 }
 0x145   :  { %v2944_v50 = vpop.f32.mrf.mxu1 }
 0x147   :  { %v2946_v55 = vpop.f32.mrf.mxu1 }
 0x149   :  { %v2948_v57 = vpop.f32.mrf.mxu1 }
 0x14c   :  { %v2950_v63 = vpop.f32.mrf.mxu1 }
 0x14d   :  { %v1737_v0 = vpop.f32.mrf.mxu0 }
 0x14e   :  { %v2952_v58 = vpop.f32.mrf.mxu1  ;;  %v536_v39 = vadd.f32 %v1793_v49, %v1737_v0 }
 0x14f   :  { %v228_v6 = vpop.f32.mrf.mxu0 }
 0x152   :  { %v2954_v12 = vpop.f32.mrf.mxu1 }
 0x153   :  { %v1740_v37 = vpop.f32.mrf.mxu0 }
 0x154   :  { %v2956_v62 = vpop.f32.mrf.mxu1 }
 0x155   :  { %v248_v45 = vpop.f32.mrf.mxu0 }
 0x158   :  { %v2958_v5 = vpop.f32.mrf.mxu1 }
 0x159   :  { %v2960_v42 = vpop.f32.mrf.mxu0 }
 0x15a   :  { %v2962_v4 = vpop.f32.mrf.mxu1 }
 0x15b   :  { %v2964_v36 = vpop.f32.mrf.mxu0 }
 0x15e   :  { %v2966_v1 = vpop.f32.mrf.mxu1 }
 0x15f   :  { %v2968_v52 = vpop.f32.mrf.mxu0 }
 0x160   :  { %v2970_v18 = vpop.f32.mrf.mxu1 }
 0x161   :  { %v2972_v38 = vpop.f32.mrf.mxu0 }
 0x164   :  { %v2974_v46 = vpop.f32.mrf.mxu1 }
 0x165   :  { %v2976_v21 = vpop.f32.mrf.mxu0 }
 0x166   :  { %v2978_v33 = vpop.f32.mrf.mxu1 }
 0x167   :  { %3243 = vst [vmem:[#allocation2_spill] sm:$0xff] %v2978_v33  ;;  %v2980_v51 = vpop.f32.mrf.mxu0 }
 0x16a   :  { %v2982_v17 = vpop.f32.mrf.mxu1 }
 0x16b   :  { %3244 = vst [vmem:[#allocation3_spill] sm:$0xff] %v2982_v17  ;;  %v2984_v30 = vpop.f32.mrf.mxu0 }
 0x16c   :  { %v2986_v19 = vpop.f32.mrf.mxu1 }
 0x16d   :  { %3245 = vst [vmem:[#allocation10_spill] sm:$0xff] %v2986_v19  ;;  %v2988_v20 = vpop.f32.mrf.mxu0  ;;  %v530_v19 = vadd.f32 %v2944_v50, %v228_v6 }
 0x170   :  { %v1905_v44 = vpop.f32.mrf.mxu1 }
 0x171   :  { %v2990_v13 = vpop.f32.mrf.mxu0 }
 0x172   :  { %v917_v41 = vpop.f32.mrf.mxu1 }
 0x173   :  { %v2992_v22 = vpop.f32.mrf.mxu0 }
 0x176   :  { %v1908_v59 = vpop.f32.mrf.mxu1 }
 0x177   :  { %v2994_v8 = vpop.f32.mrf.mxu0 }
 0x178   :  { %3246 = vst [vmem:[#allocation4_spill] sm:$0xff] %v2994_v8  ;;  %v2996_v23 = vpop.f32.mrf.mxu1 }
 0x179   :  { %v2998_v48 = vpop.f32.mrf.mxu0 }
 0x17a   :  { %3247 = vst [vmem:[#allocation5_spill] sm:$0xff] %v2998_v48 }
 0x17c   :  { %v3000_v28 = vpop.f32.mrf.mxu1 }
 0x17d   :  { %v1849_v2 = vpop.f32.mrf.mxu0 }
 0x17e   :  { %v3002_v9 = vpop.f32.mrf.mxu1 }
 0x17f   :  { %v723_v10 = vpop.f32.mrf.mxu0 }
 0x180   :  { %v724_v17 = vadd.f32 %v723_v10, %v530_v19 }
 0x182   :  { %v3004_v14 = vpop.f32.mrf.mxu1 }
 0x183   :  { %v1852_v15 = vpop.f32.mrf.mxu0 }
 0x184   :  { %v3006_v16 = vpop.f32.mrf.mxu1 }
 0x185   :  { %v737_v25 = vpop.f32.mrf.mxu0 }
 0x188   :  { %v3008_v26 = vpop.f32.mrf.mxu1 }
 0x189   :  { %v1855_v27 = vpop.f32.mrf.mxu0 }
 0x18a   :  { %v3010_v29 = vpop.f32.mrf.mxu1 }
 0x18b   :  { %v751_v31 = vpop.f32.mrf.mxu0 }
 0x18e   :  { %v3012_v34 = vpop.f32.mrf.mxu1 }
 0x18f   :  { %3248 = vst [vmem:[#allocation12_spill] sm:$0xff] %v3012_v34  ;;  %v1858_v35 = vpop.f32.mrf.mxu0  ;;  %v542_v34 = vadd.f32 %v2948_v57, %v248_v45  ;;  %v572_v45 = vadd.f32 %v2954_v12, %v2968_v52 }
 0x190   :  { %v3014_v43 = vpop.f32.mrf.mxu1 }
 0x191   :  { %3249 = vst [vmem:[#allocation9_spill] sm:$0xff] %v3014_v43  ;;  %v765_v47 = vpop.f32.mrf.mxu0  ;;  %v738_v50 = vadd.f32 %v737_v25, %v542_v34  ;;  %v773_v25 = vadd.f32 %v1858_v35, %v572_v45 }
 0x194   :  { %v3016_v53 = vpop.f32.mrf.mxu1 }
 0x195   :  { %3250 = vst [vmem:[#allocation6_spill] sm:$0xff] %v3016_v53  ;;  %v3018_v54 = vpop.f32.mrf.mxu0 }
 0x196   :  { %v3020_v56 = vpop.f32.mrf.mxu1 }
 0x197   :  { %3251 = vst [vmem:[#allocation7_spill] sm:$0xff] %v3020_v56  ;;  %v3022_v60 = vpop.f32.mrf.mxu0  ;;  %v731_v56 = vadd.f32 %v1849_v2, %v536_v39  ;;  %v918_v39 = vadd.f32 %v917_v41, %v724_v17 }
 0x199   :  { %v926_v49 = vadd.f32 %v1905_v44, %v731_v56 }
 0x19a   :  { %v3024_v61 = vpop.f32.mrf.mxu1 }
 0x19b   :  { %3252 = vst [vmem:[#allocation11_spill] sm:$0xff] %v3024_v61  ;;  %v3026_v3 = vpop.f32.mrf.mxu0  ;;  %v548_v61 = vadd.f32 %v2946_v55, %v1740_v37  ;;  %v554_v55 = vadd.f32 %v2952_v58, %v2964_v36  ;;  %v934_v58 = vadd.f32 %v2996_v23, %v738_v50  ;;  %v566_v36 = vadd.f32 %v2956_v62, %v2972_v38 }
 0x19c   :  { %v3028_v7 = vpop.f32.mrf.mxu1 }
 0x19d   :  { %3253 = vst [vmem:[#allocation14_spill] sm:$0xff] %v3028_v7  ;;  %v3030_v11 = vpop.f32.mrf.mxu0  ;;  %v745_v33 = vadd.f32 %v1852_v15, %v548_v61  ;;  %v752_v15 = vadd.f32 %v751_v31, %v554_v55  ;;  %v766_v34 = vadd.f32 %v765_v47, %v566_v36  ;;  %v974_v47 = vadd.f32 %v3004_v14, %v773_v25  ;;  %v3262_v55 = vld [vmem:[#allocation3_spill] sm:$0xff] }
 0x19f   :  { %v942_v57 = vadd.f32 %v1908_v59, %v745_v33  ;;  %v950_v35 = vadd.f32 %v3002_v9, %v752_v15 }
 0x1a0   :  { %v2017_v24 = vpop.f32.mrf.mxu1  ;;  %v3032_v32 = vpop.f32.mrf.mxu0 }
 0x1a1   :  { %3254 = vst [vmem:[#allocation8_spill] sm:$0xff] %v3032_v32 }
 0x1a2   :  { %v1333_v40 = vpop.f32.mrf.mxu1  ;;  %v3034_v53 = vpop.f32.mrf.mxu0 }
 0x1a3   :  { %3255 = vst [vmem:[#allocation13_spill] sm:$0xff] %v3034_v53  ;;  %v560_v53 = vadd.f32 %v2950_v63, %v2960_v42 }
 0x1a4   :  { %v2020_v48 = vpop.f32.mrf.mxu1 }
 0x1a5   :  { %v3037_v43 = vpop.f32.mrf.mxu0  ;;  %v759_v19 = vadd.f32 %v1855_v27, %v560_v53  ;;  %v584_v27 = vadd.f32 %v2958_v5, %v2976_v21 }
 0x1a6   :  { %3256 = vst [vmem:[#allocation16_spill] sm:$0xff] %v3037_v43  ;;  %v1345_v8 = vpop.f32.mrf.mxu1 }
 0x1a7   :  { %v3040_v7 = vpop.f32.mrf.mxu0  ;;  %v958_v59 = vadd.f32 %v3000_v28, %v759_v19  ;;  %v787_v28 = vadd.f32 %v3018_v54, %v584_v27  ;;  %v966_v54 = vadd.f32 %v3006_v16, %v766_v34 }
 0x1a8   :  { %3257 = vst [vmem:[#allocation15_spill] sm:$0xff] %v3040_v7  ;;  %v2023_v32 = vpop.f32.mrf.mxu1 }
 0x1a9   :  { %v1961_v0 = vpop.f32.mrf.mxu0 }
 0x1aa   :  { %v1163_v6 = vadd.f32 %v1961_v0, %v926_v49  ;;  %v1357_v2 = vpop.f32.mrf.mxu1 }
 0x1ab   :  { %v1156_v37 = vpop.f32.mrf.mxu0 }
 0x1ac   :  { %v1340_v10 = vadd.f32 %v2017_v24, %v1163_v6  ;;  %v1157_v7 = vadd.f32 %v1156_v37, %v918_v39  ;;  %v2026_v43 = vpop.f32.mrf.mxu1  ;;  %v3261_v39 = vld [vmem:[#allocation4_spill] sm:$0xff] }
 0x1ad   :  { %v1964_v44 = vpop.f32.mrf.mxu0  ;;  %v620_v37 = vadd.f32 %v3262_v55, %v3261_v39  ;;  %v3267_v36 = vld [vmem:[#allocation16_spill] sm:$0xff] }
 0x1ae   :  { %1428 = vst [vmem:[%s3138_s2 + $0x8] sm:$0xff] %v1340_v10  ;;  %v1334_v63 = vadd.f32 %v1333_v40, %v1157_v7  ;;  %v1175_v42 = vadd.f32 %v1964_v44, %v942_v57  ;;  %v1369_v17 = vpop.f32.mrf.mxu1  ;;  %v590_v7 = vadd.f32 %v2970_v18, %v2988_v20  ;;  %v3264_v44 = vld [vmem:[#allocation9_spill] sm:$0xff] }
 0x1af   :  { %v1168_v41 = vpop.f32.mrf.mxu0 }
 0x1b0   :  { %1427 = vst [vmem:[%s3138_s2] sm:$0xff] %v1334_v63  ;;  %v1352_v12 = vadd.f32 %v2020_v48, %v1175_v42  ;;  %v1169_v52 = vadd.f32 %v1168_v41, %v934_v58  ;;  %v2029_v33 = vpop.f32.mrf.mxu1  ;;  %v578_v48 = vadd.f32 %v2962_v4, %v2980_v51  ;;  %v794_v16 = vadd.f32 %v3030_v11, %v590_v7  ;;  %v3260_v11 = vld [vmem:[#allocation12_spill] sm:$0xff]  ;;  %v3265_v63 = vld [vmem:[#allocation5_spill] sm:$0xff]  ;;  %v3266_v42 = vld [vmem:[#allocation10_spill] sm:$0xff] }
 0x1b1   :  { %v1967_v31 = vpop.f32.mrf.mxu0  ;;  %v829_v41 = vadd.f32 %v3267_v36, %v620_v37 }
 0x1b2   :  { %1430 = vst [vmem:[%s3138_s2 + $0x18] sm:$0xff] %v1352_v12  ;;  %v1346_v62 = vadd.f32 %v1345_v8, %v1169_v52  ;;  %v1187_v38 = vadd.f32 %v1967_v31, %v958_v59  ;;  %v1381_v23 = vpop.f32.mrf.mxu1  ;;  %v596_v8 = vadd.f32 %v2966_v1, %v2984_v30  ;;  %v780_v9 = vadd.f32 %v3022_v60, %v578_v48  ;;  %v3268_v52 = vld [vmem:[#allocation6_spill] sm:$0xff]  ;;  %v3269_v31 = vld [vmem:[#allocation15_spill] sm:$0xff] }
 0x1b3   :  { %v1180_v53 = vpop.f32.mrf.mxu0  ;;  %v990_v60 = vadd.f32 %v3008_v26, %v787_v28  ;;  %v3259_v26 = vld [vmem:[#allocation8_spill] sm:$0xff]  ;;  %v998_v15 = vadd.f32 %v3264_v44, %v794_v16 }
 0x1b4   :  { %1429 = vst [vmem:[%s3138_s2 + $0x10] sm:$0xff] %v1346_v62  ;;  %v1364_v5 = vadd.f32 %v2023_v32, %v1187_v38  ;;  %v1181_v21 = vadd.f32 %v1180_v53, %v950_v35  ;;  %v2032_v56 = vpop.f32.mrf.mxu1  ;;  %v801_v14 = vadd.f32 %v3026_v3, %v596_v8  ;;  %v608_v32 = vadd.f32 %v2974_v46, %v2990_v13 }
 0x1b5   :  { %v1970_v61 = vpop.f32.mrf.mxu0  ;;  %v982_v3 = vadd.f32 %v3010_v29, %v780_v9  ;;  %v3263_v29 = vld [vmem:[#allocation13_spill] sm:$0xff]  ;;  %v3272_v9 = vld [vmem:[#allocation14_spill] sm:$0xff] }
 0x1b6   :  { %1432 = vst [vmem:[%s3138_s2 + $0x28] sm:$0xff] %v1364_v5  ;;  %v1358_v4 = vadd.f32 %v1357_v2, %v1181_v21  ;;  %v1199_v51 = vadd.f32 %v1970_v61, %v974_v47  ;;  %v1393_v40 = vpop.f32.mrf.mxu1  ;;  %v815_v6 = vadd.f32 %v3259_v26, %v608_v32  ;;  %v1006_v2 = vadd.f32 %v3260_v11, %v801_v14  ;;  %v3271_v5 = vld [vmem:[#allocation11_spill] sm:$0xff] }
 0x1b7   :  { %v1192_v24 = vpop.f32.mrf.mxu0  ;;  %v1038_v21 = vadd.f32 %v3271_v5, %v829_v41 }
 0x1b8   :  { %1431 = vst [vmem:[%s3138_s2 + $0x20] sm:$0xff] %v1358_v4  ;;  %v1376_v1 = vadd.f32 %v2026_v43, %v1199_v51  ;;  %v1193_v30 = vadd.f32 %v1192_v24, %v966_v54  ;;  %v3258_v43 = vld [vmem:[#allocation2_spill] sm:$0xff]  ;;  %v2035_v19 = vpop.f32.mrf.mxu1 }
 0x1b9   :  { %v1973_v49 = vpop.f32.mrf.mxu0  ;;  %v602_v0 = vadd.f32 %v3258_v43, %v2992_v22 }
 0x1ba   :  { %1434 = vst [vmem:[%s3138_s2 + $0x38] sm:$0xff] %v1376_v1  ;;  %v1370_v18 = vadd.f32 %v1369_v17, %v1193_v30  ;;  %v1211_v20 = vadd.f32 %v1973_v49, %v990_v60  ;;  %v614_v17 = vadd.f32 %v3266_v42, %v3265_v63  ;;  %v1405_v59 = vpop.f32.mrf.mxu1 }
 0x1bb   :  { %v1204_v50 = vpop.f32.mrf.mxu0  ;;  %v808_v57 = vadd.f32 %v3263_v29, %v602_v0 }
 0x1bc   :  { %1433 = vst [vmem:[%s3138_s2 + $0x30] sm:$0xff] %v1370_v18  ;;  %v1388_v46 = vadd.f32 %v2029_v33, %v1211_v20  ;;  %v1205_v13 = vadd.f32 %v1204_v50, %v982_v3  ;;  %v1022_v33 = vadd.f32 %v3268_v52, %v815_v6  ;;  %v822_v34 = vadd.f32 %v3269_v31, %v614_v17  ;;  %v2038_v47 = vpop.f32.mrf.mxu1 }
 0x1bd   :  { %v1976_v10 = vpop.f32.mrf.mxu0 }
 0x1be   :  { %1436 = vst [vmem:[%s3138_s2 + $0x48] sm:$0xff] %v1388_v46  ;;  %v1382_v22 = vadd.f32 %v1381_v23, %v1205_v13  ;;  %v1223_v45 = vadd.f32 %v1976_v10, %v1006_v2  ;;  %v3270_v23 = vld [vmem:[#allocation7_spill] sm:$0xff]  ;;  %v1030_v4 = vadd.f32 %v3272_v9, %v822_v34  ;;  %v1417_v24 = vpop.f32.mrf.mxu1 }
 0x1bf   :  { %v1216_v58 = vpop.f32.mrf.mxu0  ;;  %v1014_v35 = vadd.f32 %v3270_v23, %v808_v57 }
 0x1c0   :  { %1435 = vst [vmem:[%s3138_s2 + $0x40] sm:$0xff] %v1382_v22  ;;  %v1400_v25 = vadd.f32 %v2032_v56, %v1223_v45  ;;  %v1217_v12 = vadd.f32 %v1216_v58, %v998_v15 }
 0x1c1   :  { %v1979_v27 = vpop.f32.mrf.mxu0 }
 0x1c2   :  { %1438 = vst [vmem:[%s3138_s2 + $0x58] sm:$0xff] %v1400_v25  ;;  %v1394_v62 = vadd.f32 %v1393_v40, %v1217_v12  ;;  %v1235_v38 = vadd.f32 %v1979_v27, %v1022_v33 }
 0x1c3   :  { %v1228_v48 = vpop.f32.mrf.mxu0 }
 0x1c4   :  { %1437 = vst [vmem:[%s3138_s2 + $0x50] sm:$0xff] %v1394_v62  ;;  %v1412_v53 = vadd.f32 %v2035_v19, %v1235_v38  ;;  %v1229_v28 = vadd.f32 %v1228_v48, %v1014_v35 }
 0x1c5   :  { %v1982_v8 = vpop.f32.mrf.mxu0 }
 0x1c6   :  { %1440 = vst [vmem:[%s3138_s2 + $0x68] sm:$0xff] %v1412_v53  ;;  %v1406_v56 = vadd.f32 %v1405_v59, %v1229_v28  ;;  %v1247_v61 = vadd.f32 %v1982_v8, %v1038_v21 }
 0x1c7   :  { %v1240_v51 = vpop.f32.mrf.mxu0 }
 0x1c8   :  { %1439 = vst [vmem:[%s3138_s2 + $0x60] sm:$0xff] %v1406_v56  ;;  %v1424_v54 = vadd.f32 %v2038_v47, %v1247_v61  ;;  %v1241_v7 = vadd.f32 %v1240_v51, %v1030_v4 }
 0x1ca   :  { %1442 = vst [vmem:[%s3138_s2 + $0x78] sm:$0xff] %v1424_v54  ;;  %v1418_v14 = vadd.f32 %v1417_v24, %v1241_v7 }
 0x1cc   :  { %1441 = vst [vmem:[%s3138_s2 + $0x70] sm:$0xff] %v1418_v14 }

</bundles_post_ra>
